<compile_context>
chip_gen: v5e
topology: v5e:2x2
jax: 0.10.0
libtpu: 0.0.40
codegen_flags: <defaults>
</compile_context>

<pallas_src>
import functools
import math

import jax
import jax.numpy as jnp
from jax.experimental import pallas as pl
from jax.experimental.pallas import tpu as pltpu

_VMEM_LIMIT = 48 * 1024 * 1024  # leaves headroom even on v7x (64 MiB physical)


def _round_up(x, m):
    return ((x + m - 1) // m) * m


def _pick_row_tile(rows, row_tile):
    """Large MXU M-fill, no host-side padding; >=2 parallel steps when there is
    enough work so v7x's second TensorCore is not idle."""
    tile = min(row_tile, max(8, _round_up(rows, 8)))
    if rows >= 16 and pl.cdiv(rows, tile) < 2:
        tile = max(8, _round_up(pl.cdiv(rows, 2), 8))
    return tile


# ---------------------------------------------------------------------------
# Fused projections: q, q2, q3, k, v in ONE kernel (stacked resident weights)
# ---------------------------------------------------------------------------
def _proj_kernel(x1_ref, x2_ref, xk_ref, xv_ref, w_ref, b_ref,
                 q_ref, q2_ref, q3_ref, k_ref, v_ref):
    def mm(x_ref, idx, o_ref):
        h = jnp.dot(x_ref[...].astype(jnp.float32), w_ref[idx],
                    preferred_element_type=jnp.float32) + b_ref[idx]
        o_ref[...] = h.astype(o_ref.dtype)

    mm(x1_ref, 0, q_ref)     # q_proj(query1)
    mm(x2_ref, 1, q2_ref)    # q_proj2(query2)
    mm(xk_ref, 2, q3_ref)    # q_proj3(key)
    mm(xk_ref, 3, k_ref)     # k_proj(key)   (same resident VMEM input block)
    mm(xv_ref, 4, v_ref)     # v_proj(value)


def fused_projections(x1, x2, xk, xv, w_stack, b_stack, *, row_tile=512):
    """x*: (rows, E); w_stack: (5, E, E); b_stack: (5, 1, E) -> five (rows, E)."""
    rows, d_in = x1.shape
    assert x2.shape == xk.shape == xv.shape == (rows, d_in)
    d_out = w_stack.shape[2]
    tile = _pick_row_tile(rows, row_tile)
    # d_out tiling keeps the resident weight block bounded at large E.
    n_tile = d_out if (d_out <= 512 or d_out % 256 != 0) else 256
    grid = (pl.cdiv(rows, tile), pl.cdiv(d_out, n_tile))

    cost = pl.CostEstimate(
        flops=5 * 2 * rows * d_in * d_out,
        transcendentals=0,
        bytes_accessed=4 * (4 * rows * d_in + 5 * d_in * d_out + 5 * d_out
                            + 5 * rows * d_out),
    )
    x_spec = pl.BlockSpec((tile, d_in), lambda i, j: (i, 0))
    o_spec = pl.BlockSpec((tile, n_tile), lambda i, j: (i, j))
    out_shape = tuple(jax.ShapeDtypeStruct((rows, d_out), x1.dtype)
                      for _ in range(5))
    return pl.pallas_call(
        _proj_kernel,
        out_shape=out_shape,
        grid_spec=pltpu.PrefetchScalarGridSpec(
            num_scalar_prefetch=0,
            grid=grid,
            in_specs=[
                x_spec, x_spec, x_spec, x_spec,
                pl.BlockSpec((5, d_in, n_tile), lambda i, j: (0, 0, j)),  # weights
                pl.BlockSpec((5, 1, n_tile), lambda i, j: (0, 0, j)),     # biases
            ],
            out_specs=[o_spec, o_spec, o_spec, o_spec, o_spec],
        ),
        compiler_params=pltpu.CompilerParams(
            dimension_semantics=("parallel", "parallel"),
            vmem_limit_bytes=_VMEM_LIMIT),
        cost_estimate=cost,
    )(x1, x2, xk, xv, w_stack, b_stack)


# ---------------------------------------------------------------------------
# Fused attention core + out_proj: per-batch, heads split IN-kernel
# ---------------------------------------------------------------------------
def _attn_kernel(mask_ref, q_ref, q2_ref, q3_ref, k_ref, v_ref, wo_ref, bo_ref,
                 o_ref, aw_ref, *, num_heads, head_dim, q_scale, t_scale,
                 use_mask):
    f32 = jnp.float32
    T = q_ref.shape[1]
    H, hd = num_heads, head_dim

    # Stack the three query streams -> per head one (3T, hd) MXU LHS with 3x
    # M-fill; fold 1/sqrt(hd) * 1/temperature into a single scale on this small
    # (3T, E) operand instead of two scalar passes over (T, S).
    qcat = jnp.concatenate(
        [q_ref[0], q2_ref[0], q3_ref[0]], axis=0).astype(f32) * q_scale  # (3T, E)
    k = k_ref[0].astype(f32)                                             # (S, E)
    v = v_ref[0].astype(f32)                                             # (S, E)
    if use_mask:
        mask = mask_ref[...].astype(f32)      # pre-scaled by 1/t in the wrapper

    inv3 = 1.0 / 3.0
    ctx_parts = []
    for h in range(H):                         # static unroll: all heads / step
        sl = slice(h * hd, (h + 1) * hd)
        # (3T, hd) x (S, hd)^T -> (3T, S) logits for all three streams at once.
        s_all = jax.lax.dot_general(qcat[:, sl], k[:, sl],
                                    (((1,), (1,)), ((), ())),
                                    preferred_element_type=f32)
        s1 = s_all[:T]
        s2 = s_all[T:2 * T]
        s3 = s_all[2 * T:]
        if use_mask:
            s1 = s1 + mask
            s2 = s2 + mask

        def flat_softmax(s):
            # softmax over the *flattened* (T, S) block (matches the PyTorch
            # view(B, H, -1) softmax): single global max + denominator.
            m = jnp.max(s)
            e = jnp.exp(s - m)
            return e, jnp.sum(e)

        e1, d1 = flat_softmax(s1)
        e2, d2 = flat_softmax(s2)
        e3, d3 = flat_softmax(s3)

        w1 = e1 * (t_scale / d1)               # returned attention weights
        # 1/3 averaging folded into the per-stream scales (no extra full pass).
        comb = (w1 * inv3
                + e2 * ((t_scale * inv3) / d2)
                + e3 * ((t_scale * inv3) / d3))
        aw_ref[0, h] = w1.astype(aw_ref.dtype)
        ctx_parts.append(jnp.dot(comb, v[:, sl],
                                 preferred_element_type=f32))            # (T, hd)

    attn_te = jnp.concatenate(ctx_parts, axis=1)                         # (T, E)
    # Fused out_proj: avoids an extra pallas_call + HBM round trip.
    out = jnp.dot(attn_te, wo_ref[...].astype(f32),
                  preferred_element_type=f32) + bo_ref[...].astype(f32)
    o_ref[0] = out.astype(o_ref.dtype)


def _attention_core(q, q2, q3, k, v, mask, w_o, b_o, *, num_heads, temperature,
                    use_mask):
    """q/q2/q3: (B, T, E); k/v: (B, S, E); mask: (T, S) already /temperature."""
    B, T, E = q.shape
    S = k.shape[1]
    hd = E // num_heads
    kern = functools.partial(
        _attn_kernel,
        num_heads=num_heads, head_dim=hd,
        q_scale=1.0 / (math.sqrt(hd) * float(temperature)),
        t_scale=float(T), use_mask=use_mask)

    cost = pl.CostEstimate(
        flops=B * (2 * 3 * T * S * E + 2 * T * S * E + 2 * T * E * E),
        transcendentals=3 * B * num_heads * T * S,
        bytes_accessed=4 * (5 * B * T * E + T * S + E * E + E
                            + B * T * E + B * num_heads * T * S),
    )
    out, attn_w = pl.pallas_call(
        kern,
        out_shape=(jax.ShapeDtypeStruct((B, T, E), q.dtype),
                   jax.ShapeDtypeStruct((B, num_heads, T, S), jnp.float32)),
        grid_spec=pltpu.PrefetchScalarGridSpec(
            num_scalar_prefetch=0,
            grid=(B,),
            in_specs=[
                pl.BlockSpec((T, S), lambda b: (0, 0)),          # mask (resident)
                pl.BlockSpec((1, T, E), lambda b: (b, 0, 0)),    # q
                pl.BlockSpec((1, T, E), lambda b: (b, 0, 0)),    # q2
                pl.BlockSpec((1, T, E), lambda b: (b, 0, 0)),    # q3
                pl.BlockSpec((1, S, E), lambda b: (b, 0, 0)),    # k
                pl.BlockSpec((1, S, E), lambda b: (b, 0, 0)),    # v
                pl.BlockSpec((E, E), lambda b: (0, 0)),          # out_proj W (res.)
                pl.BlockSpec((1, E), lambda b: (0, 0)),          # out_proj b (res.)
            ],
            out_specs=[
                pl.BlockSpec((1, T, E), lambda b: (b, 0, 0)),
                pl.BlockSpec((1, num_heads, T, S), lambda b: (b, 0, 0, 0)),
            ],
        ),
        compiler_params=pltpu.CompilerParams(
            dimension_semantics=("parallel",),
            vmem_limit_bytes=_VMEM_LIMIT),
        cost_estimate=cost,
    )(mask, q, q2, q3, k, v, w_o, b_o)
    return out, attn_w


# ---------------------------------------------------------------------------
# Full forward
# ---------------------------------------------------------------------------
def simple_multihead_attention_forward(params, query1, query2, key, value,
                                        attn_mask=None, *, num_heads,
                                        temperature, row_tile=512):
    B, T, E = query1.shape
    S = key.shape[1]
    assert S == T, "reference module views attn weights as (B, H, T, T)"
    assert E % num_heads == 0

    names = ("q_proj", "q_proj2", "q_proj3", "k_proj", "v_proj")
    # In real use these stacks would be built once at parameter-load time.
    w_stack = jnp.stack([params[n][0] for n in names])              # (5, E, E)
    b_stack = jnp.stack([params[n][1] for n in names]).reshape(5, 1, E)

    q, q2, q3, k, v = fused_projections(
        query1.reshape(-1, E), query2.reshape(-1, E),
        key.reshape(-1, E), value.reshape(-1, E),
        w_stack, b_stack, row_tile=row_tile)

    # (B*T, E) -> (B, T, E): pure metadata reshape, no HBM transpose anywhere.
    q, q2, q3 = q.reshape(B, T, E), q2.reshape(B, T, E), q3.reshape(B, T, E)
    k, v = k.reshape(B, S, E), v.reshape(B, S, E)

    use_mask = attn_mask is not None
    if use_mask:
        # TODO(synk): only a broadcastable (T, S) attn_mask is supported here
        # (per-batch / per-head mask shapes would need a batched mask BlockSpec).
        mask = (jnp.broadcast_to(attn_mask.astype(jnp.float32), (T, S))
                / float(temperature))
    else:
        mask = jnp.zeros((T, S), jnp.float32)

    w_o, b_o = params["out_proj"]
    output, attn_weights = _attention_core(
        q, q2, q3, k, v, mask, w_o, b_o.reshape(1, E),
        num_heads=num_heads, temperature=temperature, use_mask=use_mask)
    # TODO(synk): nn.Dropout on the attention weights is identity at p=0.0 /
    # eval; a stochastic dropout path is not implemented.
    # TODO(synk): attn_weights could optionally be emitted in bf16 (or skipped)
    # to halve HBM writeback at large T if downstream tolerates it.
    return output, attn_weights


# ---------------------------------------------------------------------------
# Params + plain-JAX reference
# ---------------------------------------------------------------------------
def make_params(key, embed_dim, *, zero_out_proj=True):
    names = ["q_proj", "q_proj2", "q_proj3", "k_proj", "v_proj", "out_proj"]
    params = {}
    bound = 1.0 / math.sqrt(embed_dim)  # PyTorch nn.Linear default init range
    for name in names:
        key, kw, kb = jax.random.split(key, 3)
        if name == "out_proj" and zero_out_proj:
            w = jnp.zeros((embed_dim, embed_dim), jnp.float32)
            b = jnp.zeros((embed_dim,), jnp.float32)
        else:
            w = jax.random.uniform(kw, (embed_dim, embed_dim), jnp.float32,
                                   -bound, bound)
            b = jax.random.uniform(kb, (embed_dim,), jnp.float32, -bound, bound)
        params[name] = (w, b)
    return params


def reference_forward(params, query1, query2, key, value, attn_mask=None, *,
                      num_heads, temperature):
    def lin(x, name):
        w, b = params[name]
        return jnp.einsum("btd,de->bte", x, w) + b

    q, q2, q3 = lin(query1, "q_proj"), lin(query2, "q_proj2"), lin(key, "q_proj3")
    k, v = lin(key, "k_proj"), lin(value, "v_proj")
    B, T, E = q.shape
    S = k.shape[1]
    hd = E // num_heads

    def heads(x, L):
        return x.reshape(B, L, num_heads, hd).transpose(0, 2, 1, 3)

    q, q2, q3, k, v = heads(q, T), heads(q2, T), heads(q3, T), heads(k, S), heads(v, S)
    scale = 1.0 / math.sqrt(hd)
    aw1 = jnp.einsum("bhtd,bhsd->bhts", q, k) * scale
    aw2 = jnp.einsum("bhtd,bhsd->bhts", q2, k) * scale
    aw3 = jnp.einsum("bhtd,bhsd->bhts", q3, k) * scale
    if attn_mask is not None:
        aw1 = aw1 + attn_mask
        aw2 = aw2 + attn_mask

    def gsm(a):
        flat = a.reshape(B, num_heads, -1) / temperature
        return jax.nn.softmax(flat, axis=-1).reshape(B, num_heads, T, S) * T

    aw1, aw2, aw3 = gsm(aw1), gsm(aw2), gsm(aw3)
    out = jnp.einsum("bhts,bhsd->bhtd", (aw1 + aw2 + aw3) / 3.0, v)
    out = out.transpose(0, 2, 1, 3).reshape(B, T, E)
    w_o, b_o = params["out_proj"]
    return jnp.einsum("bte,ef->btf", out, w_o) + b_o, aw1


if __name__ == "__main__":
    B, T, E, H = 2, 8, 32, 4
    temperature = 0.5

    key = jax.random.PRNGKey(0)
    kp, k1, k2, k3, k4 = jax.random.split(key, 5)
    query1 = jax.random.normal(k1, (B, T, E), jnp.float32)
    query2 = jax.random.normal(k2, (B, T, E), jnp.float32)
    key_in = jax.random.normal(k3, (B, T, E), jnp.float32)
    value = jax.random.normal(k4, (B, T, E), jnp.float32)

    def check(params, attn_mask, tag):
        out, attn_w = simple_multihead_attention_forward(
            params, query1, query2, key_in, value, attn_mask=attn_mask,
            num_heads=H, temperature=temperature)
        out = jax.block_until_ready(out)
        attn_w = jax.block_until_ready(attn_w)
        ref_out, ref_w = reference_forward(
            params, query1, query2, key_in, value, attn_mask=attn_mask,
            num_heads=H, temperature=temperature)
        assert out.shape == (B, T, E) and attn_w.shape == (B, H, T, T), tag
        err_o = float(jnp.max(jnp.abs(out - ref_out)))
        err_w = float(jnp.max(jnp.abs(attn_w - ref_w)))
        assert jnp.allclose(out, ref_out, atol=1e-4, rtol=1e-4), (tag, err_o)
        assert jnp.allclose(attn_w, ref_w, atol=1e-4, rtol=1e-4), (tag, err_w)

    # 1) Spec-faithful init (out_proj zeroed, as in the module __init__), no mask.
    check(make_params(kp, E, zero_out_proj=True), None, "zero_out_proj")

    # 2) Non-zero out_proj + additive causal mask: exercises the full datapath.
    causal_mask = jnp.where(jnp.tril(jnp.ones((T, T), dtype=bool)),
                            0.0, -1e9).astype(jnp.float32)
    check(make_params(kp, E, zero_out_proj=False), causal_mask,
          "trained_with_mask")

    print("KERNEL_OK")
</pallas_src>

<mosaic_0001>
module attributes {stable_mosaic.version = 11 : i64} {
  func.func @_proj_kernel(%arg0: i32, %arg1: i32, %arg2: memref<8x32xf32, #tpu.memory_space<vmem>>, %arg3: memref<8x32xf32, #tpu.memory_space<vmem>>, %arg4: memref<8x32xf32, #tpu.memory_space<vmem>>, %arg5: memref<8x32xf32, #tpu.memory_space<vmem>>, %arg6: memref<5x32x32xf32, #tpu.memory_space<vmem>>, %arg7: memref<5x1x32xf32, #tpu.memory_space<vmem>>, %arg8: memref<8x32xf32, #tpu.memory_space<vmem>>, %arg9: memref<8x32xf32, #tpu.memory_space<vmem>>, %arg10: memref<8x32xf32, #tpu.memory_space<vmem>>, %arg11: memref<8x32xf32, #tpu.memory_space<vmem>>, %arg12: memref<8x32xf32, #tpu.memory_space<vmem>>) attributes {dimension_semantics = [#tpu.dimension_semantics<parallel>, #tpu.dimension_semantics<parallel>], iteration_bounds = array<i64: 2, 1>, scalar_prefetch = 0 : i64, scratch_operands = 0 : i64, tpu.core_type = #tpu.core_type<tc>, window_params = [{transform_indices = @transform_0, window_bounds = array<i64: 8, 32>}, {transform_indices = @transform_1, window_bounds = array<i64: 8, 32>}, {transform_indices = @transform_2, window_bounds = array<i64: 8, 32>}, {transform_indices = @transform_3, window_bounds = array<i64: 8, 32>}, {transform_indices = @transform_4, window_bounds = array<i64: 5, 32, 32>}, {transform_indices = @transform_5, window_bounds = array<i64: 5, 1, 32>}, {transform_indices = @transform_6, window_bounds = array<i64: 8, 32>}, {transform_indices = @transform_7, window_bounds = array<i64: 8, 32>}, {transform_indices = @transform_8, window_bounds = array<i64: 8, 32>}, {transform_indices = @transform_9, window_bounds = array<i64: 8, 32>}, {transform_indices = @transform_10, window_bounds = array<i64: 8, 32>}]} {
    %c0 = arith.constant 0 : index
    %c0_0 = arith.constant 0 : index
    %0 = vector.load %arg2[%c0, %c0_0] : memref<8x32xf32, #tpu.memory_space<vmem>>, vector<8x32xf32>
    %c0_1 = arith.constant 0 : index
    %c0_2 = arith.constant 0 : index
    %c0_3 = arith.constant 0 : index
    %1 = vector.load %arg6[%c0_1, %c0_2, %c0_3] : memref<5x32x32xf32, #tpu.memory_space<vmem>>, vector<1x32x32xf32>
    %2 = vector.shape_cast %1 : vector<1x32x32xf32> to vector<32x32xf32>
    %cst = arith.constant dense<0.000000e+00> : vector<8x32xf32>
    %3 = tpu.matmul %0, %2, %cst {dimension_numbers = #tpu.dot_dimension_numbers<[1], [0], [0], [1], [0, 0, 1, 1], [], []>} : vector<8x32xf32>, vector<32x32xf32>, vector<8x32xf32> -> vector<8x32xf32>
    %c0_4 = arith.constant 0 : index
    %c0_5 = arith.constant 0 : index
    %c0_6 = arith.constant 0 : index
    %4 = vector.load %arg7[%c0_4, %c0_5, %c0_6] : memref<5x1x32xf32, #tpu.memory_space<vmem>>, vector<1x1x32xf32>
    %5 = vector.shape_cast %4 : vector<1x1x32xf32> to vector<1x32xf32>
    %6 = vector.broadcast %5 : vector<1x32xf32> to vector<8x32xf32>
    %7 = arith.addf %3, %6 : vector<8x32xf32>
    %c0_7 = arith.constant 0 : index
    %c0_8 = arith.constant 0 : index
    %8 = vector.load %arg8[%c0_7, %c0_8] : memref<8x32xf32, #tpu.memory_space<vmem>>, vector<8x32xf32>
    tpu.vector_store %arg8[%c0_7, %c0_8], %7 {strides = array<i32>} : memref<8x32xf32, #tpu.memory_space<vmem>>, vector<8x32xf32>,
    %c0_9 = arith.constant 0 : index
    %c0_10 = arith.constant 0 : index
    %9 = vector.load %arg3[%c0_9, %c0_10] : memref<8x32xf32, #tpu.memory_space<vmem>>, vector<8x32xf32>
    %c1 = arith.constant 1 : index
    %c0_11 = arith.constant 0 : index
    %c0_12 = arith.constant 0 : index
    %10 = vector.load %arg6[%c1, %c0_11, %c0_12] : memref<5x32x32xf32, #tpu.memory_space<vmem>>, vector<1x32x32xf32>
    %11 = vector.shape_cast %10 : vector<1x32x32xf32> to vector<32x32xf32>
    %cst_13 = arith.constant dense<0.000000e+00> : vector<8x32xf32>
    %12 = tpu.matmul %9, %11, %cst_13 {dimension_numbers = #tpu.dot_dimension_numbers<[1], [0], [0], [1], [0, 0, 1, 1], [], []>} : vector<8x32xf32>, vector<32x32xf32>, vector<8x32xf32> -> vector<8x32xf32>
    %c1_14 = arith.constant 1 : index
    %c0_15 = arith.constant 0 : index
    %c0_16 = arith.constant 0 : index
    %13 = vector.load %arg7[%c1_14, %c0_15, %c0_16] : memref<5x1x32xf32, #tpu.memory_space<vmem>>, vector<1x1x32xf32>
    %14 = vector.shape_cast %13 : vector<1x1x32xf32> to vector<1x32xf32>
    %15 = vector.broadcast %14 : vector<1x32xf32> to vector<8x32xf32>
    %16 = arith.addf %12, %15 : vector<8x32xf32>
    %c0_17 = arith.constant 0 : index
    %c0_18 = arith.constant 0 : index
    %17 = vector.load %arg9[%c0_17, %c0_18] : memref<8x32xf32, #tpu.memory_space<vmem>>, vector<8x32xf32>
    tpu.vector_store %arg9[%c0_17, %c0_18], %16 {strides = array<i32>} : memref<8x32xf32, #tpu.memory_space<vmem>>, vector<8x32xf32>,
    %c0_19 = arith.constant 0 : index
    %c0_20 = arith.constant 0 : index
    %18 = vector.load %arg4[%c0_19, %c0_20] : memref<8x32xf32, #tpu.memory_space<vmem>>, vector<8x32xf32>
    %c2 = arith.constant 2 : index
    %c0_21 = arith.constant 0 : index
    %c0_22 = arith.constant 0 : index
    %19 = vector.load %arg6[%c2, %c0_21, %c0_22] : memref<5x32x32xf32, #tpu.memory_space<vmem>>, vector<1x32x32xf32>
    %20 = vector.shape_cast %19 : vector<1x32x32xf32> to vector<32x32xf32>
    %cst_23 = arith.constant dense<0.000000e+00> : vector<8x32xf32>
    %21 = tpu.matmul %18, %20, %cst_23 {dimension_numbers = #tpu.dot_dimension_numbers<[1], [0], [0], [1], [0, 0, 1, 1], [], []>} : vector<8x32xf32>, vector<32x32xf32>, vector<8x32xf32> -> vector<8x32xf32>
    %c2_24 = arith.constant 2 : index
    %c0_25 = arith.constant 0 : index
    %c0_26 = arith.constant 0 : index
    %22 = vector.load %arg7[%c2_24, %c0_25, %c0_26] : memref<5x1x32xf32, #tpu.memory_space<vmem>>, vector<1x1x32xf32>
    %23 = vector.shape_cast %22 : vector<1x1x32xf32> to vector<1x32xf32>
    %24 = vector.broadcast %23 : vector<1x32xf32> to vector<8x32xf32>
    %25 = arith.addf %21, %24 : vector<8x32xf32>
    %c0_27 = arith.constant 0 : index
    %c0_28 = arith.constant 0 : index
    %26 = vector.load %arg10[%c0_27, %c0_28] : memref<8x32xf32, #tpu.memory_space<vmem>>, vector<8x32xf32>
    tpu.vector_store %arg10[%c0_27, %c0_28], %25 {strides = array<i32>} : memref<8x32xf32, #tpu.memory_space<vmem>>, vector<8x32xf32>,
    %c0_29 = arith.constant 0 : index
    %c0_30 = arith.constant 0 : index
    %27 = vector.load %arg4[%c0_29, %c0_30] : memref<8x32xf32, #tpu.memory_space<vmem>>, vector<8x32xf32>
    %c3 = arith.constant 3 : index
    %c0_31 = arith.constant 0 : index
    %c0_32 = arith.constant 0 : index
    %28 = vector.load %arg6[%c3, %c0_31, %c0_32] : memref<5x32x32xf32, #tpu.memory_space<vmem>>, vector<1x32x32xf32>
    %29 = vector.shape_cast %28 : vector<1x32x32xf32> to vector<32x32xf32>
    %cst_33 = arith.constant dense<0.000000e+00> : vector<8x32xf32>
    %30 = tpu.matmul %27, %29, %cst_33 {dimension_numbers = #tpu.dot_dimension_numbers<[1], [0], [0], [1], [0, 0, 1, 1], [], []>} : vector<8x32xf32>, vector<32x32xf32>, vector<8x32xf32> -> vector<8x32xf32>
    %c3_34 = arith.constant 3 : index
    %c0_35 = arith.constant 0 : index
    %c0_36 = arith.constant 0 : index
    %31 = vector.load %arg7[%c3_34, %c0_35, %c0_36] : memref<5x1x32xf32, #tpu.memory_space<vmem>>, vector<1x1x32xf32>
    %32 = vector.shape_cast %31 : vector<1x1x32xf32> to vector<1x32xf32>
    %33 = vector.broadcast %32 : vector<1x32xf32> to vector<8x32xf32>
    %34 = arith.addf %30, %33 : vector<8x32xf32>
    %c0_37 = arith.constant 0 : index
    %c0_38 = arith.constant 0 : index
    %35 = vector.load %arg11[%c0_37, %c0_38] : memref<8x32xf32, #tpu.memory_space<vmem>>, vector<8x32xf32>
    tpu.vector_store %arg11[%c0_37, %c0_38], %34 {strides = array<i32>} : memref<8x32xf32, #tpu.memory_space<vmem>>, vector<8x32xf32>,
    %c0_39 = arith.constant 0 : index
    %c0_40 = arith.constant 0 : index
    %36 = vector.load %arg5[%c0_39, %c0_40] : memref<8x32xf32, #tpu.memory_space<vmem>>, vector<8x32xf32>
    %c4 = arith.constant 4 : index
    %c0_41 = arith.constant 0 : index
    %c0_42 = arith.constant 0 : index
    %37 = vector.load %arg6[%c4, %c0_41, %c0_42] : memref<5x32x32xf32, #tpu.memory_space<vmem>>, vector<1x32x32xf32>
    %38 = vector.shape_cast %37 : vector<1x32x32xf32> to vector<32x32xf32>
    %cst_43 = arith.constant dense<0.000000e+00> : vector<8x32xf32>
    %39 = tpu.matmul %36, %38, %cst_43 {dimension_numbers = #tpu.dot_dimension_numbers<[1], [0], [0], [1], [0, 0, 1, 1], [], []>} : vector<8x32xf32>, vector<32x32xf32>, vector<8x32xf32> -> vector<8x32xf32>
    %c4_44 = arith.constant 4 : index
    %c0_45 = arith.constant 0 : index
    %c0_46 = arith.constant 0 : index
    %40 = vector.load %arg7[%c4_44, %c0_45, %c0_46] : memref<5x1x32xf32, #tpu.memory_space<vmem>>, vector<1x1x32xf32>
    %41 = vector.shape_cast %40 : vector<1x1x32xf32> to vector<1x32xf32>
    %42 = vector.broadcast %41 : vector<1x32xf32> to vector<8x32xf32>
    %43 = arith.addf %39, %42 : vector<8x32xf32>
    %c0_47 = arith.constant 0 : index
    %c0_48 = arith.constant 0 : index
    %44 = vector.load %arg12[%c0_47, %c0_48] : memref<8x32xf32, #tpu.memory_space<vmem>>, vector<8x32xf32>
    tpu.vector_store %arg12[%c0_47, %c0_48], %43 {strides = array<i32>} : memref<8x32xf32, #tpu.memory_space<vmem>>, vector<8x32xf32>,
    return
  }
  func.func @transform_0(%arg0: i32, %arg1: i32) -> (i32, i32) {
    %c0_i32 = arith.constant 0 : i32
    %c0_i32_0 = arith.constant 0 : i32
    return %arg0, %c0_i32 : i32, i32
  }
  func.func @transform_1(%arg0: i32, %arg1: i32) -> (i32, i32) {
    %c0_i32 = arith.constant 0 : i32
    %c0_i32_0 = arith.constant 0 : i32
    return %arg0, %c0_i32 : i32, i32
  }
  func.func @transform_2(%arg0: i32, %arg1: i32) -> (i32, i32) {
    %c0_i32 = arith.constant 0 : i32
    %c0_i32_0 = arith.constant 0 : i32
    return %arg0, %c0_i32 : i32, i32
  }
  func.func @transform_3(%arg0: i32, %arg1: i32) -> (i32, i32) {
    %c0_i32 = arith.constant 0 : i32
    %c0_i32_0 = arith.constant 0 : i32
    return %arg0, %c0_i32 : i32, i32
  }
  func.func @transform_4(%arg0: i32, %arg1: i32) -> (i32, i32, i32) {
    %c0_i32 = arith.constant 0 : i32
    %c0_i32_0 = arith.constant 0 : i32
    %c0_i32_1 = arith.constant 0 : i32
    return %c0_i32, %c0_i32_0, %arg1 : i32, i32, i32
  }
  func.func @transform_5(%arg0: i32, %arg1: i32) -> (i32, i32, i32) {
    %c0_i32 = arith.constant 0 : i32
    %c0_i32_0 = arith.constant 0 : i32
    %c0_i32_1 = arith.constant 0 : i32
    return %c0_i32, %c0_i32_0, %arg1 : i32, i32, i32
  }
  func.func @transform_6(%arg0: i32, %arg1: i32) -> (i32, i32) {
    %c0_i32 = arith.constant 0 : i32
    return %arg0, %arg1 : i32, i32
  }
  func.func @transform_7(%arg0: i32, %arg1: i32) -> (i32, i32) {
    %c0_i32 = arith.constant 0 : i32
    return %arg0, %arg1 : i32, i32
  }
  func.func @transform_8(%arg0: i32, %arg1: i32) -> (i32, i32) {
    %c0_i32 = arith.constant 0 : i32
    return %arg0, %arg1 : i32, i32
  }
  func.func @transform_9(%arg0: i32, %arg1: i32) -> (i32, i32) {
    %c0_i32 = arith.constant 0 : i32
    return %arg0, %arg1 : i32, i32
  }
  func.func @transform_10(%arg0: i32, %arg1: i32) -> (i32, i32) {
    %c0_i32 = arith.constant 0 : i32
    return %arg0, %arg1 : i32, i32
  }
}

</mosaic_0001>

<bundles_post_ra>
// kernel: tpu_custom_call.1
= control target key start
LH: loop header
LB: loop body
LE: loop exit
PB: predicated region body
PF: predicated region fallthrough
CT: control target
= control target key end

     0   :  { %s2167_s0 = inlined_call_operand.hbm [shape: f32[16,32], index: 0, kind: input, shape index: {}]   ;;  %s2168_s1 = inlined_call_operand.hbm [shape: f32[16,32], index: 1, kind: input, shape index: {}]   ;;  %s2169_s2 = inlined_call_operand.hbm [shape: f32[16,32], index: 2, kind: input, shape index: {}]   ;;  %s2170_s3 = inlined_call_operand.hbm [shape: f32[16,32], index: 3, kind: input, shape index: {}]   ;;  %s2171_s4 = inlined_call_operand.hbm [shape: f32[5,32,32], index: 4, kind: input, shape index: {}]   ;;  %s2172_s5 = inlined_call_operand.hbm [shape: f32[5,1,32], index: 5, kind: input, shape index: {}]   ;;  %s2173_s6 = inlined_call_operand.hbm [shape: f32[16,32], index: 6, kind: output, shape index: {0}]   ;;  %s2174_s7 = inlined_call_operand.hbm [shape: f32[16,32], index: 7, kind: output, shape index: {1}]   ;;  %s2175_s8 = inlined_call_operand.hbm [shape: f32[16,32], index: 8, kind: output, shape index: {2}]   ;;  %s2176_s9 = inlined_call_operand.hbm [shape: f32[16,32], index: 9, kind: output, shape index: {3}]   ;;  %s2177_s10 = inlined_call_operand.hbm [shape: f32[16,32], index: 10, kind: output, shape index: {4}]  }
   0x1   :  { %2192 = sst [smem:[#allocation36_spill]] %s2167_s0 }
   0x2   :  { %2193 = sst [smem:[#allocation37_spill]] %s2168_s1 }
   0x3   :  { %2194 = sst [smem:[#allocation38_spill]] %s2169_s2 }
   0x4   :  { %2195 = sst [smem:[#allocation39_spill]] %s2171_s4 }
   0x5   :  { %2196 = sst [smem:[#allocation40_spill]] %s2172_s5 }
   0x6   :  { %2197 = sst [smem:[#allocation41_spill]] %s2175_s8 }
   0x7   :  { %2198 = sst [smem:[#allocation42_spill]] %s2177_s10 }
   0x8   :  { %16 = vsyncpa [#allocation3], 0 }
   0x9   :  { %18 = vsyncpa [#allocation3 + $0x1], 0 }
   0xa   :  { %19 = vsyncpa [#allocation6], 0 }
   0xb   :  { %21 = vsyncpa [#allocation6 + $0x1], 0 }
   0xc   :  { %22 = vsyncpa [#allocation9], 0 }
   0xd   :  { %24 = vsyncpa [#allocation9 + $0x1], 0 }
   0xe   :  { %25 = vsyncpa [#allocation12], 0 }
   0xf   :  { %26 = vsyncpa [#allocation4], 0 }
  0x10   :  { %28 = vsyncpa [#allocation4 + $0x1], 0 }
  0x11   :  { %29 = vsyncpa [#allocation15], 0 }
  0x12   :  { %31 = vsyncpa [#allocation15 + $0x1], 0 }
  0x13   :  { %32 = vsyncpa [#allocation18], 0 }
  0x14   :  { %34 = vsyncpa [#allocation18 + $0x1], 0  ;;  %s1793_s13 = smov 0   ;;  %s1795_s14 = smov 0  }
  0x15   :  { %s1797_s15 = smov 0   ;;  %s1799_s16 = smov 0  }
  0x16   :  { %s1801_s17 = smov 0   ;;  %s1803_s18 = smov 0  }
  0x17 LB: > { %2199 = sst [smem:[#allocation28_spill]] %s1710_s13  ;;  %s1824_s19 = sadd.s32 4294967295, %s1730_s18   ;;  %s1730_s18 = sphi %s1803_s18, %s40_s18   ;;  %s1726_s17 = sphi %s1801_s17, %s2235_s17   ;;  %s1722_s16 = sphi %s1799_s16, %s2234_s16   ;;  %s1718_s15 = sphi %s1797_s15, %s2233_s15   ;;  %s1714_s14 = sphi %s1795_s14, %s2237_s14   ;;  %s1710_s13 = sphi %s1793_s13, %s2236_s13  }
  0x18   : > { %2200 = sst [smem:[#allocation29_spill]] %s1718_s15  ;;  %s2178_s20 = sadd.s32 4294967294, %s1730_s18  }
  0x19   : > { %2201 = sst [smem:[#allocation30_spill]] %s1726_s17  ;;  %p72_p0 = scmp.ne.s32.totalorder %s1714_s14, %s1710_s13 }
  0x1a   : > { %p73_p1 = scmp.eq.s32.totalorder %s1824_s19, 0  ;;  %p228_p2 = scmp.eq.s32.totalorder %s1824_s19, 1 }
  0x1b   : > { %p234_p3 = scmp.eq.s32.totalorder %s2178_s20, 1  ;;  %p1164_p5 = scmp.ge.s32.totalorder %s1730_s18, 1 }
  0x1c   : > { %p1835_p4 = por %p73_p1, %p72_p0  ;;  %p353_p7 = scmp.lt.s32.totalorder %s1730_s18, 3 }
  0x1d   : > { %p1840_p6 = por %p234_p3, %p72_p0  ;;  %s2205_s4 = sld [smem:[#allocation39_spill]] }
  0x1e   : > { %p1848_p8 = pnand %p1164_p5, %p353_p7  ;;  %s1732_s27 = smov [#allocation10]  }
  0x1f   : > { %s2203_s22 = scalar_select %p1840_p6, 1, 0 }
  0x20   : > { %p1231_p9 = pneg %p1848_p8  ;;  %s368_s28 = sshll.u32 %s1732_s27, 4  ;;  %s369_s28 = int_to_ptr.vmem [resolvable:$true] %s368_s28 }
  0x21   : > { %2204 = sst [smem:[#allocation31_spill]] %s2203_s22  ;;  %p1167_p11 = scmp.ge.s32.totalorder %s1730_s18, 2 }
  0x22   : > { %p1856_p10 = pnand %p1231_p9, %p73_p1  ;;  %s1733_s30 = smov 128  }
  0x23   : > { %s366_s25 = sshll.u32 %s2205_s4, 4  ;;  %s1734_s11 = smov 8   ;;  %s367_s25 = int_to_ptr.hbm [resolvable:$true] %s366_s25 }
  0x24   : > { %1234 = dma.hbm_to_vmem [thread:$0]  (!%p1856_p10), %s367_s25, 2560, %s369_s28, [#allocation9], %s1733_s30, %s1733_s30, %s1734_s11  }
  0x25   : > { %s52_s12 = sadd.s32 1, %s1726_s17  ;;  %s59_s23 = sadd.s32 1, %s1718_s15 }
  0x26   : > { %p54_p12 = scmp.ge.s32.totalorder %s52_s12, 2  ;;  %p66_p13 = scmp.ne.s32.totalorder %s1718_s15, %s1714_s14 }
  0x27   : > { %p67_p0 = scmp.eq.s32.totalorder %s1730_s18, 0  ;;  %p1269_p7 = scmp.lt.s32.totalorder %s1730_s18, 2 }
  0x28   : > { %s2239_s12 = smov (%p54_p12, %s52_s12), 0  ;;  %p1872_p5 = por %p228_p2, %p66_p13 }
  0x29   : > { %2208 = sst [smem:[#allocation32_spill]] %s2239_s12  ;;  %p68_p3 = por %p67_p0, %p66_p13 }
  0x2a   : > { %s56_s27 = ssub.s32 %s1726_s17, %s2239_s12  ;;  %s397_s25 = sand.u32 1, %s1718_s15  }
  0x2b   : > { %p57_p9 = scmp.eq.s32.totalorder %s56_s27, 0  ;;  %s1880_s28 = sshll.u32 %s397_s25, 3 }
  0x2c   : > { %s1883_s30 = sshll.u32 %s1726_s17, 3  ;;  %p1888_p12 = pnand %p1269_p7, %p68_p3 }
  0x2d   : > { %s1886_s11 = scalar_select %p57_p9, %s1718_s15, %s59_s23  }
  0x2e   : > { %s2186_s4 = sand.u32 1, %s1730_s18   ;;  %s2212_s1 = sld [smem:[#allocation37_spill]] }
  0x2f   : > { %2210 = sst [smem:[#allocation33_spill]] %s1886_s11  ;;  %s420_s10 = scalar_lea.vmem [#allocation5], %s1880_s28 }
  0x30   : > { %s428_s17 = sshll.u32 %s420_s10, 4  ;;  %s417_s23 = scalar_lea.sflag [#allocation6], %s2186_s4  ;;  %s429_s17 = int_to_ptr.vmem [resolvable:$true] %s428_s17 }
  0x31   : > { %s2213_s5 = sld [smem:[#allocation40_spill]]  ;;  %s1735_s13 = smov [#allocation11]  }
  0x32   : > { %s383_s22 = sshll.u32 %s1735_s13, 4  ;;  %s2214_s0 = sld [smem:[#allocation36_spill]]  ;;  %s384_s22 = int_to_ptr.vmem [resolvable:$true] %s383_s22 }
  0x33   : > { %s401_s15 = scalar_lea.vmem [#allocation2], %s1880_s28  ;;  %s2215_s2 = sld [smem:[#allocation38_spill]] }
  0x34   : > { %s424_s27 = scalar_lea.hbm %s2212_s1, %s1883_s30  ;;  %s1737_s1 = smov 1  }
  0x35   : > { %s426_s12 = sshll.u32 %s424_s27, 4  ;;  %s1736_s27 = smov 16   ;;  %s427_s12 = int_to_ptr.hbm [resolvable:$true] %s426_s12 }
  0x36   : > { %1244 = dma.hbm_to_vmem [thread:$0]  (!%p1888_p12), %s427_s12, 128, %s429_s17, %s417_s23  }
  0x37   : > { %s381_s8 = sshll.u32 %s2213_s5, 4  ;;  %s409_s12 = sshll.u32 %s401_s15, 4  ;;  %s382_s8 = int_to_ptr.hbm [resolvable:$true] %s381_s8  ;;  %s410_s12 = int_to_ptr.vmem [resolvable:$true] %s409_s12 }
  0x38   : > { %1237 = dma.hbm_to_vmem [thread:$0]  (!%p1856_p10), %s382_s8, 80, %s384_s22, [#allocation12], %s1736_s27, %s1736_s27, %s1737_s1  }
  0x39   : > { %s405_s17 = scalar_lea.hbm %s2214_s0, %s1883_s30  ;;  %s398_s5 = scalar_lea.sflag [#allocation3], %s397_s25 }
  0x3a   : > { %s407_s11 = sshll.u32 %s405_s17, 4  ;;  %s443_s1 = scalar_lea.hbm %s2215_s2, %s1883_s30  ;;  %s408_s11 = int_to_ptr.hbm [resolvable:$true] %s407_s11 }
  0x3b   : > { %1241 = dma.hbm_to_vmem [thread:$0]  (!%p1888_p12), %s408_s11, 128, %s410_s12, %s398_s5  }
  0x3c   : > { %s439_s8 = scalar_lea.vmem [#allocation7], %s1880_s28  ;;  %s445_s4 = sshll.u32 %s443_s1, 4  ;;  %s446_s4 = int_to_ptr.hbm [resolvable:$true] %s445_s4 }
  0x3d   : > { %s447_s22 = sshll.u32 %s439_s8, 4  ;;  %s462_s17 = scalar_lea.hbm %s2170_s3, %s1883_s30  ;;  %s448_s22 = int_to_ptr.vmem [resolvable:$true] %s447_s22 }
  0x3e   : > { %1247 = dma.hbm_to_vmem [thread:$0]  (!%p1888_p12), %s446_s4, 128, %s448_s22, %s417_s23  }
  0x3f   : > { %s458_s15 = scalar_lea.vmem [#allocation8], %s1880_s28  ;;  %s464_s0 = sshll.u32 %s462_s17, 4  ;;  %s465_s0 = int_to_ptr.hbm [resolvable:$true] %s464_s0 }
  0x40   : > { %s466_s25 = sshll.u32 %s458_s15, 4  ;;  %s2216_s5 = sand.u32 1, %s1730_s18   ;;  %s467_s25 = int_to_ptr.vmem [resolvable:$true] %s466_s25 }
  0x41   : > { %s455_s12 = scalar_lea.sflag [#allocation9], %s2216_s5  ;;  %475 = sbr.rel (%p1848_p8) target bundleno = 280 (0x118), region = 44 }
  0x42   : > { %1250 = dma.hbm_to_vmem [thread:$0]  (!%p1888_p12), %s465_s0, 128, %s467_s25, %s455_s12  }
  0x46   : > { %s1933_s11 = sand.u32 1, %s1714_s14  }
  0x47   : > { %s1936_s23 = sshll.u32 %s1933_s11, 3  ;;  %s478_s28 = scalar_lea.sflag [#allocation3], %s1933_s11 }
  0x48   : > { %s481_s30 = scalar_lea.vmem [#allocation2], %s1936_s23 }
  0x49   : > { %1677 = dma.done.wait (%p1835_p4), %s478_s28, 128  }
  0x4a   : > { %1679 = vsyncadd (%p1835_p4), %s478_s28, 4294967168  ;;  %s1945_s0 = sand.u32 1, %s1824_s19   ;;  %s491_s26 = scalar_lea.vmem [#allocation5], %s1936_s23 }
  0x4b   : > { %s488_s20 = scalar_lea.sflag [#allocation6], %s1945_s0 }
  0x4c   : > { %1681 = dma.done.wait (%p1835_p4), %s488_s20, 256  }
  0x4d   : > { %1683 = vsyncadd (%p1835_p4), %s488_s20, 4294967040  ;;  %s501_s13 = scalar_lea.vmem [#allocation7], %s1936_s23  ;;  %s508_s29 = scalar_lea.sflag [#allocation9], %s1945_s0 }
  0x4e   : > { %s511_s1 = scalar_lea.vmem [#allocation8], %s1936_s23 }
  0x4f   : > { %1685 = dma.done.wait (%p1835_p4), %s508_s29, 128  }
  0x50   : > { %1687 = vsyncadd (%p1835_p4), %s508_s29, 4294967168 }
  0x51   : > { %1689 = dma.done.wait (%p73_p1), [#allocation9], 2560  }
  0x52   : > { %1691 = vsyncadd (%p73_p1), [#allocation9], 4294964736 }
  0x53   : > { %1693 = dma.done.wait (%p73_p1), [#allocation12], 80  }
  0x54   : > { %1695 = vsyncadd (%p73_p1), [#allocation12], 4294967216  ;;  %v598_v0 = vld [vmem:[#allocation10 + $0x18] sm:$0xff]  ;;  %v597_v2 = vld [vmem:[#allocation10 + $0x10] sm:$0xff]  ;;  %vm603_vm0 = vcmask 261120   ;;  %s1982_s19 = sshll.u32 %s1722_s16, 3 }
  0x55   : > { %v703_v1 = vld [vmem:[#allocation10 + $0x78] sm:$0xff]  ;;  %619 = vmatpush.msra.mxu0 %v598_v0  ;;  %v702_v4 = vld [vmem:[#allocation10 + $0x70] sm:$0xff]  ;;  %v596_v5 = vld [vmem:[#allocation10 + $0x8] sm:$0xff]  ;;  %s815_s22 = scalar_lea.hbm %s2174_s7, %s1982_s19  ;;  %s2189_s4 = scalar_lea.vmem [#allocation14], %s1936_s23 }
  0x56   : > { %724 = vmatpush.msra.mxu3 %v703_v1  ;;  %v668_v3 = vld [vmem:[#allocation10 + $0x58] sm:$0xff]  ;;  %v667_v6 = vld [vmem:[#allocation10 + $0x50] sm:$0xff]  ;;  %v701_v7 = vld [vmem:[#allocation10 + $0x68] sm:$0xff]  ;;  %s1991_s27 = sshll.u32 %s2189_s4, 4  ;;  %s1993_s10 = sshll.u32 %s815_s22, 4 }
  0x57   : > { %689 = vmatpush.msra.mxu2 %v668_v3  ;;  %620 = vmatpush.msra.mxu0 %v597_v2  ;;  %v666_v8 = vld [vmem:[#allocation10 + $0x48] sm:$0xff]  ;;  %v633_v9 = vld [vmem:[#allocation10 + $0x38] sm:$0xff]  ;;  %v595_v10 = vld [vmem:[#allocation10] sm:$0xff]  ;;  %2217 = sst [smem:[#allocation34_spill]] %s1991_s27  ;;  %s800_s16 = scalar_lea.hbm %s2173_s6, %s1982_s19 }
  0x58   : > { %725 = vmatpush.msra.mxu3 %v702_v4  ;;  %654 = vmatpush.msra.mxu1 %v633_v9  ;;  %v700_v11 = vld [vmem:[#allocation10 + $0x60] sm:$0xff]  ;;  %v632_v14 = vld [vmem:[#allocation10 + $0x30] sm:$0xff]  ;;  %v738_v15 = vld [vmem:[#allocation10 + $0x98] sm:$0xff]  ;;  %2218 = sst [smem:[#allocation35_spill]] %s1993_s10  ;;  %s845_s12 = scalar_lea.hbm %s2176_s9, %s1982_s19 }
  0x59   : > { %690 = vmatpush.msra.mxu2 %v667_v6  ;;  %621 = vmatpush.msra.mxu0 %v596_v5  ;;  %v594_v12 = vld [vmem:[%s481_s30] sm:$0xff]  ;;  %v737_v17 = vld [vmem:[#allocation10 + $0x90] sm:$0xff]  ;;  %s565_s28 = scalar_lea.vmem [#allocation13], %s1936_s23  ;;  %s804_s20 = sshll.u32 %s800_s16, 4  ;;  %s805_s20 = int_to_ptr.hbm [resolvable:$true] %s804_s20 }
  0x5a   : > { %726 = vmatpush.msra.mxu3 %v701_v7  ;;  %v665_v13 = vld [vmem:[#allocation10 + $0x40] sm:$0xff]  ;;  %655 = vmatpush.msra.mxu1 %v632_v14  ;;  %v631_v18 = vld [vmem:[#allocation10 + $0x28] sm:$0xff]  ;;  %v628_v21 = vld [vmem:[%s491_s26] sm:$0xff]  ;;  %s2006_s30 = sshll.u32 %s565_s28, 4  ;;  %s2187_s26 = scalar_lea.vmem [#allocation17], %s1936_s23  ;;  %s803_s30 = int_to_ptr.vmem [resolvable:$true] %s2006_s30 }
  0x5b   : > { %691 = vmatpush.msra.mxu2 %v666_v8  ;;  %v698_v16 = vld [vmem:[%s501_s13] sm:$0xff]  ;;  %622 = vmatpush.msra.mxu0 %v595_v10  ;;  %v733_v23 = vld [vmem:[%s511_s1] sm:$0xff]  ;;  %s2011_s13 = sshll.u32 %s2187_s26, 4  ;;  %s2013_s29 = sshll.u32 %s845_s12, 4  ;;  %s848_s13 = int_to_ptr.vmem [resolvable:$true] %s2011_s13  ;;  %s850_s29 = int_to_ptr.hbm [resolvable:$true] %s2013_s29 }
  0x5c   : > { %727 = vmatpush.msra.mxu3 %v700_v11  ;;  %1188 = vmatmul.msk.f32.vlgmr.msra.gmra.mxu0 %vm603_vm0, %v594_v12  ;;  %v630_v19 = vld [vmem:[#allocation10 + $0x20] sm:$0xff]  ;;  %v736_v20 = vld [vmem:[#allocation10 + $0x88] sm:$0xff]  ;;  %s2219_s8 = sld [smem:[#allocation41_spill]]  ;;  %s769_s26 = scalar_lea.sflag [#allocation4], %s1933_s11 }
  0x5d   : > { %692 = vmatpush.msra.mxu2 %v665_v13  ;;  %759 = vmatpush.msrb.mxu0 %v738_v15  ;;  %v735_v22 = vld [vmem:[#allocation10 + $0x80] sm:$0xff]  ;;  %s2220_s16 = sld [smem:[#allocation42_spill]]  ;;  %s1526_s27 = sshra.s32 %s805_s20, 4  ;;  %s1527_s27 = int_to_ptr.hbm [resolvable:$true] %s1526_s27 }
  0x5e   : > { %1191 = vmatmul.msk.f32.vlgmr.msra.gmra.mxu3 %vm603_vm0, %v698_v16  ;;  %1190 = vmatmul.msk.f32.vlgmr.msra.gmra.mxu2 %vm603_vm0, %v698_v16  ;;  %v1327_v24 = vld [vmem:[#allocation11] ss:$0 sm:$0xff]  ;;  %v1328_v27 = vld [vmem:[#allocation11 + $0x1] ss:$0 sm:$0xff]  ;;  %v1329_v28 = vld [vmem:[#allocation11 + $0x3] ss:$0 sm:$0xff]  ;;  %p1533_p8 = scmp.lt.s32.totalorder %s1527_s27, %s2173_s6 }
  0x5f   : > { %656 = vmatpush.msra.mxu1 %v631_v18  ;;  %760 = vmatpush.msrb.mxu0 %v737_v17  ;;  %s1528_s12 = scalar_lea.hbm %s1527_s27, 8  ;;  %s1532_s1 = scalar_lea.hbm %s2173_s6, 16 }
  0x60   : > { %p1529_p1 = scmp.ne.s32.totalorder %s1527_s27, %s1528_s12  ;;  %p1534_p10 = scmp.lt.s32.totalorder %s1532_s1, %s1528_s12 }
  0x61   : > { %657 = vmatpush.msra.mxu1 %v630_v19  ;;  %761 = vmatpush.msrb.mxu0 %v736_v20 }
  0x62   : > { %1189 = vmatmul.msk.f32.vlgmr.msra.gmra.mxu1 %vm603_vm0, %v628_v21  ;;  %s830_s22 = scalar_lea.hbm %s2219_s8, %s1982_s19  ;;  %p1530_p2 = pnand %p1529_p1, %p1872_p5 }
  0x63   : > { %762 = vmatpush.msrb.mxu0 %v735_v22  ;;  %s2221_s25 = smov %s2220_s16  ;;  %s860_s5 = scalar_lea.hbm %s2220_s16, %s1982_s19 }
  0x64   : > { %1192 = vmatmul.msk.f32.vlgmr.msrb.gmra.mxu0 %vm603_vm0, %v733_v23  ;;  %p1531_p4 = pneg %p1530_p2  ;;  %p1535_p13 = por %p1534_p10, %p1533_p8 }
  0x66   : > { %p1536_p0 = pnand %p1535_p13, %p1531_p4 }
  0xd9   : > { %v624_v25 = vpop.f32.mrf.mxu0 }
  0xda   : > { %v625_v26 = vadd.f32 %v1327_v24, %v624_v25 }
  0xdc   : > { %627 = vst.msk [vmem:[%s565_s28] sm:$0xff] %vm603_vm0, %v625_v26 }
  0xdd   : > { %1539 = shalt.err (!%p1536_p0)
}
  0xde   : > { %1221 = dma.vmem_to_hbm [thread:$0]  (%p1872_p5), %s803_s30, 128, %s805_s20, %s769_s26   ;;  %v1330_v30 = vld [vmem:[#allocation11 + $0x2] ss:$0 sm:$0xff]  ;;  %v1331_v31 = vld [vmem:[#allocation11 + $0x4] ss:$0 sm:$0xff] }
  0xdf   : > { %v659_v29 = vpop.f32.mrf.mxu1  ;;  %s579_s11 = scalar_lea.vmem [#allocation16], %s1936_s23  ;;  %s2041_s19 = sshll.u32 %s830_s22, 4  ;;  %s835_s19 = int_to_ptr.hbm [resolvable:$true] %s2041_s19 }
  0xe0   : > { %s2039_s2 = sshll.u32 %s579_s11, 4  ;;  %v660_v32 = vadd.f32 %v1328_v27, %v659_v29  ;;  %s2222_s4 = sld [smem:[#allocation35_spill]]  ;;  %s833_s2 = int_to_ptr.vmem [resolvable:$true] %s2039_s2 }
  0xe1   : > { %v729_v33 = vpop.f32.mrf.mxu3  ;;  %s593_s27 = scalar_lea.vmem [#allocation19], %s1936_s23  ;;  %s2050_s28 = sshll.u32 %s860_s5, 4  ;;  %v694_v35 = vpop.f32.mrf.mxu2  ;;  %s865_s28 = int_to_ptr.hbm [resolvable:$true] %s2050_s28 }
  0xe2   : > { %s2048_s10 = sshll.u32 %s593_s27, 4  ;;  %v730_v34 = vadd.f32 %v1329_v28, %v729_v33  ;;  %v764_v36 = vpop.f32.mrf.mxu0  ;;  %s2223_s30 = scalar_lea.vmem [#allocation14], %s1936_s23  ;;  %v695_v37 = vadd.f32 %v1330_v30, %v694_v35  ;;  %s863_s10 = int_to_ptr.vmem [resolvable:$true] %s2048_s10 }
  0xe3   : > { %662 = vst.msk [vmem:[%s2223_s30] sm:$0xff] %vm603_vm0, %v660_v32  ;;  %v765_v38 = vadd.f32 %v1331_v31, %v764_v36  ;;  %s774_s20 = scalar_lea.sflag [#allocation15], %s1945_s0  ;;  %s1560_s5 = scalar_lea.hbm %s2174_s7, 16 }
  0xe6   : > { %s2224_s26 = int_to_ptr.hbm [resolvable:$true] %s2222_s4 }
  0xe7   : > { %s1554_s22 = sshra.s32 %s2224_s26, 4  ;;  %s1555_s22 = int_to_ptr.hbm [resolvable:$true] %s1554_s22 }
  0xe8   : > { %s1556_s17 = scalar_lea.hbm %s1555_s22, 8  ;;  %p1561_p12 = scmp.lt.s32.totalorder %s1555_s22, %s2174_s7 }
  0xe9   : > { %p1557_p3 = scmp.ne.s32.totalorder %s1555_s22, %s1556_s17  ;;  %p1562_p1 = scmp.lt.s32.totalorder %s1560_s5, %s1556_s17 }
  0xeb   : > { %p1558_p7 = pnand %p1557_p3, %p1872_p5  ;;  %p1563_p2 = por %p1562_p1, %p1561_p12 }
  0xed   : > { %p1559_p9 = pneg %p1558_p7 }
  0xef   : > { %p1564_p4 = pnand %p1563_p2, %p1559_p9 }
  0xf1   : > { %1567 = shalt.err (!%p1564_p4)
}
  0xf2   : > { %s2225_s21 = smov %s2224_s26  ;;  %s2226_s30 = sld [smem:[#allocation34_spill]] }
  0xf3   : > { %s2228_s22 = scalar_lea.vmem [#allocation17], %s1936_s23  ;;  %s784_s17 = scalar_lea.sflag [#allocation18], %s1945_s0 }
  0xf4   : > { %732 = vst.msk [vmem:[%s2228_s22] sm:$0xff] %vm603_vm0, %v730_v34  ;;  %s1582_s15 = sshra.s32 %s850_s29, 4  ;;  %s1588_s12 = scalar_lea.hbm %s2176_s9, 16  ;;  %s1583_s15 = int_to_ptr.hbm [resolvable:$true] %s1582_s15 }
  0xf5   : > { %s1584_s16 = scalar_lea.hbm %s1583_s15, 8  ;;  %p1589_p0 = scmp.lt.s32.totalorder %s1583_s15, %s2176_s9 }
  0xf6   : > { %p1585_p8 = scmp.ne.s32.totalorder %s1583_s15, %s1584_s16  ;;  %p1590_p3 = scmp.lt.s32.totalorder %s1588_s12, %s1584_s16 }
  0xf8   : > { %s2227_s26 = int_to_ptr.vmem [resolvable:$true] %s2226_s30  ;;  %p1586_p10 = pnand %p1585_p8, %p1872_p5 }
  0xf9   : > { %1222 = dma.vmem_to_hbm [thread:$0]  (%p1872_p5), %s2227_s26, 128, %s2225_s21, %s774_s20  }
  0xfa   : > { %p1587_p13 = pneg %p1586_p10  ;;  %p1591_p7 = por %p1590_p3, %p1589_p0 }
  0xfc   : > { %p1592_p9 = pnand %p1591_p7, %p1587_p13 }
  0xfe   : > { %1595 = shalt.err (!%p1592_p9)
}
  0xff   : > { %1224 = dma.vmem_to_hbm [thread:$0]  (%p1872_p5), %s848_s13, 128, %s850_s29, %s784_s17   ;;  %697 = vst.msk [vmem:[%s579_s11] sm:$0xff] %vm603_vm0, %v695_v37 }
 0x100   : > { %s1610_s30 = sshra.s32 %s835_s19, 4  ;;  %s1616_s16 = scalar_lea.hbm %s2219_s8, 16  ;;  %s1611_s30 = int_to_ptr.hbm [resolvable:$true] %s1610_s30 }
 0x101   : > { %s1612_s26 = scalar_lea.hbm %s1611_s30, 8  ;;  %p1617_p4 = scmp.lt.s32.totalorder %s1611_s30, %s2219_s8 }
 0x102   : > { %p1613_p12 = scmp.ne.s32.totalorder %s1611_s30, %s1612_s26  ;;  %p1618_p8 = scmp.lt.s32.totalorder %s1616_s16, %s1612_s26 }
 0x104   : > { %p1614_p1 = pnand %p1613_p12, %p1872_p5  ;;  %p1619_p10 = por %p1618_p8, %p1617_p4 }
 0x106   : > { %p1615_p2 = pneg %p1614_p1 }
 0x108   : > { %p1620_p13 = pnand %p1619_p10, %p1615_p2 }
 0x10a   : > { %1623 = shalt.err (!%p1620_p13)
}
 0x10b   : > { %1223 = dma.vmem_to_hbm [thread:$0]  (%p1872_p5), %s833_s2, 128, %s835_s19, %s774_s20   ;;  %767 = vst.msk [vmem:[%s593_s27] sm:$0xff] %vm603_vm0, %v765_v38 }
 0x10c   : > { %s1638_s13 = sshra.s32 %s865_s28, 4  ;;  %s1644_s1 = scalar_lea.hbm %s2221_s25, 16  ;;  %s1639_s13 = int_to_ptr.hbm [resolvable:$true] %s1638_s13 }
 0x10d   : > { %s1640_s29 = scalar_lea.hbm %s1639_s13, 8  ;;  %p1645_p9 = scmp.lt.s32.totalorder %s1639_s13, %s2221_s25 }
 0x10e   : > { %p1641_p0 = scmp.ne.s32.totalorder %s1639_s13, %s1640_s29  ;;  %p1646_p12 = scmp.lt.s32.totalorder %s1644_s1, %s1640_s29 }
 0x110   : > { %p1642_p3 = pnand %p1641_p0, %p1872_p5  ;;  %p1647_p1 = por %p1646_p12, %p1645_p9 }
 0x112   : > { %p1643_p7 = pneg %p1642_p3 }
 0x114   : > { %p1648_p2 = pnand %p1647_p1, %p1643_p7 }
 0x116   : > { %1651 = shalt.err (!%p1648_p2)
}
 0x117   : > { %1225 = dma.vmem_to_hbm [thread:$0]  (%p1872_p5), %s863_s10, 128, %s865_s28, %s784_s17  }
 0x118 PF: > { %s2229_s23 = sld [smem:[#allocation28_spill]]  ;;  %p1252_p4 = pnand %p1167_p11, %p1840_p6 }
 0x11a   : > { %p1253_p8 = pneg %p1252_p4 }
 0x11e   : > { %s876_s19 = sand.u32 1, %s2229_s23  }
 0x11f   : > { %s877_s27 = scalar_lea.sflag [#allocation4], %s876_s19 }
 0x120   : > { %1697 = dma.done.wait (%p1253_p8), %s877_s27, 128  }
 0x121   : > { %1699 = vsyncadd (%p1253_p8), %s877_s27, 4294967168  ;;  %s2231_s24 = sadd.s32 4294967294, %s1730_s18  }
 0x122   : > { %s886_s0 = sand.u32 1, %s2231_s24  }
 0x123   : > { %s887_s20 = scalar_lea.sflag [#allocation15], %s886_s0 }
 0x124   : > { %1701 = dma.done.wait (%p1253_p8), %s887_s20, 256  }
 0x125   : > { %1703 = vsyncadd (%p1253_p8), %s887_s20, 4294967040  ;;  %s907_s26 = scalar_lea.sflag [#allocation18], %s886_s0 }
 0x126   : > { %1705 = dma.done.wait (%p1253_p8), %s907_s26, 256  }
 0x127   : > { %1707 = vsyncadd (%p1253_p8), %s907_s26, 4294967040  ;;  %s40_s18 = sadd.s32 1, %s1730_s18   ;;  %s2232_s10 = sld [smem:[#allocation29_spill]] }
 0x128   : > { %p37_p5 = scmp.ge.s32.totalorder %s40_s18, 4   ;;  %s2233_s15 = sld [smem:[#allocation33_spill]] }
 0x129   : > { %s2234_s16 = sld [smem:[#allocation30_spill]]  ;;  %s2236_s13 = smov %s1714_s14 }
 0x12a   : > { %s2235_s17 = sld [smem:[#allocation32_spill]]  ;;  %39 = sbr.rel (!%p37_p5) target bundleno = 23 (0x17), region = 208 }
 0x12d   : > { %s2237_s14 = smov %s2232_s10 }
 0x12f   :  { %923 = vsyncpa [#allocation3], 1 }
 0x130   :  { %925 = vsyncpa [#allocation3 + $0x1], 1 }
 0x131   :  { %926 = vsyncpa [#allocation6], 1 }
 0x132   :  { %928 = vsyncpa [#allocation6 + $0x1], 1 }
 0x133   :  { %929 = vsyncpa [#allocation9], 1 }
 0x134   :  { %931 = vsyncpa [#allocation9 + $0x1], 1 }
 0x135   :  { %932 = vsyncpa [#allocation12], 1 }
 0x136   :  { %933 = vsyncpa [#allocation4], 1 }
 0x137   :  { %935 = vsyncpa [#allocation4 + $0x1], 1 }
 0x138   :  { %936 = vsyncpa [#allocation15], 1 }
 0x139   :  { %938 = vsyncpa [#allocation15 + $0x1], 1 }
 0x13a   :  { %939 = vsyncpa [#allocation18], 1 }
 0x13b   :  { %941 = vsyncpa [#allocation18 + $0x1], 1 }

</bundles_post_ra>
